<compile_context>
chip_gen: v7x
topology: tpu7x:2x2x1
jax: 0.10.0
libtpu: 0.0.40
codegen_flags: <defaults>
</compile_context>

<pallas_src>
import jax
import jax.numpy as jnp
from jax.experimental import pallas as pl
from jax.experimental.pallas import tpu as pltpu


def _round_up(n, m):
    return ((n + m - 1) // m) * m


def _cdiv(a, b):
    return -(-a // b)


def _vmem_capacity_bytes():
    # Generation-aware VMEM query (128 MiB on v5e/v6e, 64 MiB per-TC on v7x).
    try:
        return int(pltpu.get_tpu_info().vmem_capacity_bytes)
    except Exception:
        return 64 * 1024 * 1024  # conservative fallback: safe on every generation


def classifier_head_kernel(x_ref, w_ref, b_ref, o_ref):
    # x_ref: (TB, D) batch tile of cls_token_embedding (caller dtype, bf16/f32)
    # w_ref: (1, D)  weight row, VMEM-resident across all grid steps
    # b_ref: (1, 1)  SMEM scalar bias (f32)
    # o_ref: (1, TB) lane-dense f32 output row for this batch tile
    #
    # No whole-tile upcast of x: cast the tiny (1, D) weight to x's dtype and
    # let preferred_element_type provide f32 accumulation.
    w = w_ref[...].astype(x_ref.dtype)
    # logits = w @ x.T -> (1, TB).  Contraction over the last dim of BOTH
    # operands ('od,td->ot'): no transpose/relayout of either operand in VMEM,
    # and the result is lane-major, so the store below is a full-width vst.
    logits = jnp.einsum("od,td->ot", w, x_ref[...],
                        preferred_element_type=jnp.float32)
    o_ref[...] = jax.nn.sigmoid(logits + b_ref[0, 0]).astype(o_ref.dtype)


def classifier_head(x, weight, bias, *, block_rows=None):
    """Linear(D, 1) + Sigmoid.

    x: (B, D) cls_token_embedding (f32 or bf16 — bf16 halves HBM read traffic)
    weight: (1, D); bias: (1,)
    returns: (B, 1) probabilities, float32.
    """
    B, D = x.shape
    assert weight.shape == (1, D)
    assert bias.shape == (1,)

    # --- generation-aware batch-tile sizing (op is pure HBM bandwidth) ------
    vmem_cap = _vmem_capacity_bytes()
    tile_cap_bytes = vmem_cap // 5          # ~25 MiB on v5e/v6e, ~12 MiB on v7x
    bytes_per_row = D * jnp.dtype(x.dtype).itemsize
    rows_cap = max(128, (tile_cap_bytes // max(bytes_per_row, 1)) // 128 * 128)

    SINGLE_TILE_MAX_ROWS = 1024
    if B <= SINGLE_TILE_MAX_ROWS and B * bytes_per_row <= tile_cap_bytes:
        # Small problem: one tile; pipelining / megacore split buys nothing.
        tb = _round_up(B, 8)
    else:
        tb = rows_cap if block_rows is None else max(128, min(block_rows, rows_cap))
        tb = max(128, (tb // 128) * 128)     # output lane dim must stay %128
        # v7x has 2 TensorCores: ensure the ("parallel",) batch axis has at
        # least 2 grid steps so both cores get work (no-op on v5e/v6e).
        if _cdiv(B, tb) < 2:
            tb = max(128, _round_up(_cdiv(B, 2), 128))

    n_steps = _cdiv(B, tb)
    b_pad = n_steps * tb            # out_shape padded to a tile multiple;
                                    # the INPUT is not padded (partial last block)

    # VMEM budget: 2x double-buffered x tiles + resident weight + output row,
    # scaled with the actual tile so the large-D 128-row clamp can't exceed it.
    tile_bytes = tb * bytes_per_row
    needed = (2 * tile_bytes
              + 2 * D * jnp.dtype(weight.dtype).itemsize
              + 2 * tb * 4
              + (4 << 20))
    vmem_limit = int(min(vmem_cap, max((vmem_cap * 3) // 4, needed)))
    # TODO(synk): for extreme D where even a single 128-row tile blows VMEM,
    # add a second ("arbitrary") grid axis over D with a (1, tb) f32 accumulator.

    bias_2d = bias.reshape(1, 1).astype(jnp.float32)

    out_row = pl.pallas_call(
        classifier_head_kernel,
        out_shape=jax.ShapeDtypeStruct((1, b_pad), jnp.float32),
        grid=(n_steps,),
        in_specs=[
            pl.BlockSpec((tb, D), lambda i: (i, 0)),             # x: streamed batch tiles
            pl.BlockSpec((1, D), lambda i: (0, 0)),              # weight: VMEM-resident
            pl.BlockSpec(memory_space=pltpu.MemorySpace.SMEM),   # bias scalar in SMEM
        ],
        out_specs=pl.BlockSpec((1, tb), lambda i: (0, i)),       # lane-dense output row
        compiler_params=pltpu.CompilerParams(
            dimension_semantics=("parallel",),
            vmem_limit_bytes=vmem_limit,
        ),
    )(x, weight, bias_2d)

    # Lanes past B in the last partial tile hold garbage from the masked-DMA
    # input rows — the [:B] slice is load-bearing; never reduce the full row.
    return out_row[0, :B].reshape(B, 1)


if __name__ == "__main__":
    key = jax.random.PRNGKey(0)
    k_x, k_w, k_b = jax.random.split(key, 3)

    batch, input_dim = 8, 32

    # PyTorch nn.Linear init style: U(-1/sqrt(D), 1/sqrt(D))
    bound = 1.0 / jnp.sqrt(jnp.float32(input_dim))
    weight = jax.random.uniform(k_w, (1, input_dim), jnp.float32, -bound, bound)
    bias = jax.random.uniform(k_b, (1,), jnp.float32, -bound, bound)

    cls_token_embedding = jax.random.normal(k_x, (batch, input_dim), jnp.float32)

    prob = classifier_head(cls_token_embedding, weight, bias)
    prob = jax.block_until_ready(prob)

    # Reference (plain JAX) check
    ref = jax.nn.sigmoid(cls_token_embedding @ weight.T + bias)
    assert prob.shape == (batch, 1)
    assert jnp.allclose(prob, ref.astype(prob.dtype), atol=1e-5, rtol=1e-5)

    print("KERNEL_OK")
</pallas_src>

<mosaic_0001>
module attributes {stable_mosaic.version = 11 : i64} {
  func.func @classifier_head_kernel(%arg0: i32, %arg1: memref<8x32xf32, #tpu.memory_space<vmem>>, %arg2: memref<1x32xf32, #tpu.memory_space<vmem>>, %arg3: memref<1x1xf32, #tpu.memory_space<smem>>, %arg4: memref<1x8xf32, #tpu.memory_space<vmem>>) attributes {dimension_semantics = [#tpu.dimension_semantics<parallel>], iteration_bounds = array<i64: 1>, scalar_prefetch = 0 : i64, scratch_operands = 0 : i64, tpu.core_type = #tpu.core_type<tc>, window_params = [{transform_indices = @transform_0, window_bounds = array<i64: 8, 32>}, {pipeline_mode = #tpu.pipeline_mode<synchronous>, transform_indices = @transform_1, window_bounds = array<i64: 1, 32>}, {transform_indices = @transform_2, window_bounds = array<i64: 1, 1>}, {transform_indices = @transform_3, window_bounds = array<i64: 1, 8>}]} {
    %c0 = arith.constant 0 : index
    %c0_0 = arith.constant 0 : index
    %0 = vector.load %arg2[%c0, %c0_0] : memref<1x32xf32, #tpu.memory_space<vmem>>, vector<1x32xf32>
    %c0_1 = arith.constant 0 : index
    %c0_2 = arith.constant 0 : index
    %1 = vector.load %arg1[%c0_1, %c0_2] : memref<8x32xf32, #tpu.memory_space<vmem>>, vector<8x32xf32>
    "tpu.trace_start"() <{level = 10 : i32, message = "od,td->ot"}> : () -> ()
    %cst = arith.constant dense<0.000000e+00> : vector<1x8xf32>
    %2 = tpu.matmul %0, %1, %cst {dimension_numbers = #tpu.dot_dimension_numbers<[1], [1], [0], [0], [0, 0, 1, 0], [], []>} : vector<1x32xf32>, vector<8x32xf32>, vector<1x8xf32> -> vector<1x8xf32>
    "tpu.trace_stop"() : () -> ()
    %c0_3 = arith.constant 0 : index
    %c0_4 = arith.constant 0 : index
    %3 = memref.load %arg3[%c0_3, %c0_4] : memref<1x1xf32, #tpu.memory_space<smem>>
    %4 = vector.broadcast %3 : f32 to vector<1x8xf32>
    %5 = arith.addf %2, %4 : vector<1x8xf32>
    %6 = arith.negf %5 : vector<1x8xf32>
    %7 = math.exp %6 : vector<1x8xf32>
    %cst_5 = arith.constant 1.000000e+00 : f32
    %8 = vector.broadcast %cst_5 : f32 to vector<1x8xf32>
    %9 = arith.addf %8, %7 : vector<1x8xf32>
    %10 = arith.divf %8, %9 : vector<1x8xf32>
    %c0_6 = arith.constant 0 : index
    %c0_7 = arith.constant 0 : index
    %11 = vector.load %arg4[%c0_6, %c0_7] : memref<1x8xf32, #tpu.memory_space<vmem>>, vector<1x8xf32>
    tpu.vector_store %arg4[%c0_6, %c0_7], %10 {strides = array<i32>} : memref<1x8xf32, #tpu.memory_space<vmem>>, vector<1x8xf32>,
    return
  }
  func.func @transform_0(%arg0: i32) -> (i32, i32) {
    %c0_i32 = arith.constant 0 : i32
    %c0_i32_0 = arith.constant 0 : i32
    return %arg0, %c0_i32 : i32, i32
  }
  func.func @transform_1(%arg0: i32) -> (i32, i32) {
    %c0_i32 = arith.constant 0 : i32
    %c0_i32_0 = arith.constant 0 : i32
    %c0_i32_1 = arith.constant 0 : i32
    return %c0_i32, %c0_i32_0 : i32, i32
  }
  func.func @transform_2(%arg0: i32) -> (i32, i32) {
    %c0_i32 = arith.constant 0 : i32
    %c0_i32_0 = arith.constant 0 : i32
    %c0_i32_1 = arith.constant 0 : i32
    return %c0_i32, %c0_i32_0 : i32, i32
  }
  func.func @transform_3(%arg0: i32) -> (i32, i32) {
    %c0_i32 = arith.constant 0 : i32
    %c0_i32_0 = arith.constant 0 : i32
    return %c0_i32, %arg0 : i32, i32
  }
}

</mosaic_0001>

<bundles_post_ra>
// kernel: tpu_custom_call.1
= control target key start
LH: loop header
LB: loop body
LE: loop exit
PB: predicated region body
PF: predicated region fallthrough
CT: control target
= control target key end

     0   :  { %9 = vsyncpa [#allocation4], 0  ;;  %s252_s0 = inlined_call_operand.hbm [shape: f32[8,32], index: 0, kind: input, shape index: {}]   ;;  %s253_s1 = inlined_call_operand.vmem [shape: f32[1,32], index: 1, kind: input, shape index: {}]   ;;  %s254_s2 = inlined_call_operand.<no memory space> [shape: f32[1,1], index: 2, kind: input, shape index: {}]   ;;  %s255_s3 = inlined_call_operand.hbm [shape: f32[1,8], index: 3, kind: output, shape index: {}]  }
   0x1   :  { %10 = vsyncpa [#allocation5], 0  ;;  %s198_s12 = smov [#allocation3]   ;;  %s150_s16 = scalar_lea.hbm %s252_s0, 128 }
   0x2   :  { %s17_s13 = sshll.u32 %s198_s12, 4  ;;  %p151_p0 = scmp.ne.s32.totalorder %s252_s0, %s150_s16  ;;  %s18_s13 = int_to_ptr.vmem [resolvable:$true] %s17_s13 }
   0x3   :  { %p154_p1 = scmp.lt.u32.totalorder %s150_s16, %s252_s0 }
   0x5   :  { %p156_p2 = pnand %p154_p1, %p151_p0 }
   0x7   :  { %159 = shalt.err (!%p156_p2)
}
   0x8   :  { %s160_s21 = scalar_lea.vmem %s18_s13, 128  ;;  %p165_p4 = scmp.lt.s32.totalorder %s18_s13, %s18_s13 }
   0x9   :  { %p161_p3 = scmp.ne.s32.totalorder %s18_s13, %s160_s21  ;;  %p166_p5 = scmp.lt.s32.totalorder %s160_s21, %s160_s21 }
   0xb   :  { %p167_p6 = por %p166_p5, %p165_p4 }
   0xd   :  { %p168_p7 = pnand %p167_p6, %p161_p3 }
   0xf   :  { %171 = shalt.err (!%p168_p7)
}
  0x10   :  { %20 = dma.hbm_to_vmem [thread:$0]  %s252_s0, 128, %s18_s13, [#allocation4]  }
  0x11   :  { %194 = dma.done.wait [#allocation4], 128  }
  0x12   :  { %195 = vsyncadd [#allocation4], 4294967168  ;;  %v199_v0 = vmov 0.0   ;;  %vm200_vm0 = vmmov 0   ;;  %vm32_vm1 = vcmask 261120   ;;  %v29_v1 = vld [vmem:[#allocation3] sm:$0xff]  ;;  %v31_v3 = vstv %s254_s2 }
  0x13   :  { %137 = vmatprep.subr.mxu0 %v199_v0  ;;  %139 = vmatprep.mubr.msk.f32.mxu0 %vm200_vm0, %v199_v0  ;;  %v28_v2 = vld [vmem:[%s253_s1] sm:$0x1]  ;;  %s201_s0 = smov [#allocation6]   ;;  %vm115_vm2 = vcmask 57344  }
  0x14   :  { %138 = vmatpush3.xpose.msk.msra.mxu0 %vm32_vm1, %v29_v1  ;;  %s123_s28 = sshll.u32 %s201_s0, 4  ;;  %s124_s28 = int_to_ptr.vmem [resolvable:$true] %s123_s28 }
  0x15   :  { %s172_s1 = scalar_lea.vmem %s124_s28, 16  ;;  %s176_s29 = scalar_lea.vmem %s124_s28, 32 }
  0x16   :  { %p173_p8 = scmp.ne.s32.totalorder %s124_s28, %s172_s1  ;;  %p177_p9 = scmp.lt.s32.totalorder %s124_s28, %s124_s28 }
  0x17   :  { %140 = vmatmul.mubr.msk.f32.vlgmr.msra.gmra.mrb[0].mxu0 %vm32_vm1, %v28_v2  ;;  %p178_p10 = scmp.lt.s32.totalorder %s176_s29, %s172_s1 }
  0x19   :  { %p179_p11 = por %p178_p10, %p177_p9 }
  0x1b   :  { %p180_p12 = pnand %p179_p11, %p173_p8 }
  0xea   :  { %v105_v4 = vpop.f32.mrb[0].mxu0 }
  0xeb   :  { %v106_v5 = vadd.f32 %v105_v4, %v31_v3  ;;  %v141_v6 = vpop.f32.mrb[1].mxu0 }
  0xed   :  { %v134_v7 = vmul.f32 -1.442695, %v106_v5 }
  0xef   :  { %146 = vpow2.f32 %v134_v7 }
  0xf9   :  { %v147_v8 = vpop.eup %146 }
  0xfa   :  { %v112_v9 = vadd.f32 1.0, %v147_v8 }
  0xfc   :  { %148 = vrcp.f32 %v112_v9 }
 0x106   :  { %v149_v10 = vpop.eup %148 }
 0x107   :  { %116 = vst.msk [vmem:[#allocation6] sm:$0x1] %vm115_vm2, %v149_v10 }
 0x108   :  { %183 = shalt.err (!%p180_p12)
}
 0x109   :  { %s184_s4 = scalar_lea.hbm %s255_s3, 16 }
 0x10a   :  { %p185_p13 = scmp.ne.s32.totalorder %s255_s3, %s184_s4  ;;  %p188_p0 = scmp.lt.u32.totalorder %s184_s4, %s255_s3 }
 0x10c   :  { %p190_p1 = pnand %p188_p0, %p185_p13 }
 0x10e   :  { %193 = shalt.err (!%p190_p1)
}
 0x10f   :  { %126 = dma.vmem_to_hbm [thread:$0]  %s124_s28, 16, %s255_s3, [#allocation5]  }
 0x110   :  { %196 = dma.done.wait [#allocation5], 16  }
 0x111   :  { %197 = vsyncadd [#allocation5], 4294967280 }
 0x112   :  { %130 = vsyncpa [#allocation4], 1 }
 0x113   :  { %131 = vsyncpa [#allocation5], 1 }

</bundles_post_ra>
